<compile_context>
chip_gen: v7x
topology: tpu7x:2x2x1
jax: 0.10.0
libtpu: 0.0.40
codegen_flags: <defaults>
</compile_context>

<pallas_src>
import functools

import numpy as np
import jax
import jax.numpy as jnp
from jax.experimental import pallas as pl
from jax.experimental.pallas import tpu as pltpu


B_TILE_DEFAULT = 8

# ---------------------------------------------------------------------------
# Host-side (one-time) packing of PyTorch-layout weights into matmul operators.
# Kernel activation layout: A[b*H + h, w*C + c]  (B_TILE images stacked on M).
# ---------------------------------------------------------------------------


def _conv_cols(w, w_log, src_blocks, src_stride):
    """Block-Toeplitz column operator for Conv2d(KxK, padding=K//2).
    w: (Cout, Cin, KH, KW).  Logical input column wi sits at column block
    src_stride*wi (src_stride=2 folds the post-pool column decimation)."""
    cout, cin, kh, kw = w.shape
    p = kw // 2
    t = np.zeros((kh, src_blocks * cin, w_log * cout), np.float32)
    for i in range(kh):
        for j in range(kw):
            for wo in range(w_log):
                wi = wo + j - p
                if 0 <= wi < w_log:
                    ws = src_stride * wi
                    t[i, ws * cin:(ws + 1) * cin,
                      wo * cout:(wo + 1) * cout] = w[:, :, i, j].T
    return t


def _tconv_cols(w, w_in, src_blocks, src_stride, stride=2):
    """Column operator for ConvTranspose2d(stride=2): input column wi is
    placed at output column stride*wi + j.  w: (Cin, Cout, KH, KW)."""
    cin, cout, kh, kw = w.shape
    w_out = (w_in - 1) * stride + kw
    t = np.zeros((kh, src_blocks * cin, w_out * cout), np.float32)
    for k in range(kh):
        for j in range(kw):
            for wi in range(w_in):
                ws = src_stride * wi
                wo = stride * wi + j
                t[k, ws * cin:(ws + 1) * cin,
                  wo * cout:(wo + 1) * cout] = w[:, :, k, j]
    return t


def _tconv_row_place(h_in, kh, h_src, src_stride, stride=2):
    """Row op for ConvTranspose2d(stride=2): source row src_stride*hi goes to
    output row stride*hi + k (per H-tap k)."""
    h_out = (h_in - 1) * stride + kh
    u = np.zeros((kh, h_out, h_src), np.float32)
    for k in range(kh):
        for hi in range(h_in):
            u[k, stride * hi + k, src_stride * hi] = 1.0
    return u


def _row_decimate(h_out, h_src):
    """Selects the even source rows (2x2-pool row decimation)."""
    d = np.zeros((h_out, h_src), np.float32)
    for r in range(h_out):
        d[r, 2 * r] = 1.0
    return d


def _lane_pair_shift(w_blocks, c):
    """(A @ S)[:, w*c+k] == A[:, (w+1)*c+k] (0 at last block) — 64-lane case."""
    n = w_blocks * c
    s = np.zeros((n, n), np.float32)
    for w in range(w_blocks - 1):
        for k in range(c):
            s[(w + 1) * c + k, w * c + k] = 1.0
    return s


def _bias_row(b, w_out):
    return np.tile(np.asarray(b, np.float32), w_out)[None, :]


def _pad_to(m, rows=None, cols=None):
    r = m.shape[0] if rows is None else rows
    c = m.shape[1] if cols is None else cols
    out = np.zeros((r, c), np.float32)
    out[:m.shape[0], :m.shape[1]] = m
    return out


def _block_diag(b, m):
    return np.kron(np.eye(b, dtype=np.float32), m)


def _edge_masks(b, h):
    """Per-image edge masks for batched +/-1 row shifts: zero at local row 0
    (top) / local row h-1 (bottom)."""
    top = np.ones((b * h, 1), np.float32)
    bot = np.ones((b * h, 1), np.float32)
    top[0::h, 0] = 0.0
    bot[h - 1::h, 0] = 0.0
    return top, bot


_OP_ORDER = ("T1", "b1", "M1t", "M1b",
             "PD2", "T2", "b2", "M2t", "M2b",
             "PD3", "T3", "b3", "M3t", "M3b",
             "SH3",
             "U4", "T4", "b4",
             "U5", "T5", "b5",
             "U6", "T6", "b6",
             "T7", "b7", "M7t", "M7b")


def pack_params(params, b_tile=B_TILE_DEFAULT):
    """One-time host-side packing of PyTorch-layout weights into the bf16
    matmul operators / f32 biases & masks consumed by the fused kernel."""
    g = lambda k: np.asarray(jax.device_get(params[k]), np.float32)
    w1, b1 = g("conv1_w"), g("conv1_b")
    w2, b2 = g("conv2_w"), g("conv2_b")
    w3, b3 = g("conv3_w"), g("conv3_b")
    wt1, bt1 = g("t_conv1_w"), g("t_conv1_b")
    wt2, bt2 = g("t_conv2_w"), g("t_conv2_b")
    wt3, bt3 = g("t_conv3_w"), g("t_conv3_b")
    wco, bco = g("conv_out_w"), g("conv_out_b")
    B = b_tile

    m1t, m1b = _edge_masks(B, 32)
    m2t, m2b = _edge_masks(B, 16)
    m3t, m3b = _edge_masks(B, 8)
    m7t, m7b = _edge_masks(B, 36)

    t4 = _tconv_cols(wt1, w_in=4, src_blocks=8, src_stride=2)      # (3,64,72)
    t5 = _tconv_cols(wt2, w_in=9, src_blocks=9, src_stride=1)      # (2,72,288)
    t6 = _tconv_cols(wt3, w_in=18, src_blocks=18, src_stride=1)    # (2,288,1152)
    t7 = _conv_cols(wco, w_log=36, src_blocks=36, src_stride=1)    # (3,1152,36)

    ops = {
        # conv1: 1x32x32 -> 32x32x32 (relu); row taps via rolls + masks.
        "T1": _conv_cols(w1, w_log=32, src_blocks=32, src_stride=1),   # (3,32,1024)
        "b1": _bias_row(b1, 32),
        "M1t": m1t, "M1b": m1b,
        # pool1 row decimation + conv2: 32x16x16 -> 16x16x16
        "PD2": _block_diag(B, _row_decimate(16, 32)),                  # (B*16, B*32)
        "T2": np.concatenate(list(_conv_cols(w2, 16, 32, 2)), axis=0), # (3072, 256)
        "b2": _bias_row(b2, 16),
        "M2t": m2t, "M2b": m2b,
        # pool2 + conv3: 16x8x8 -> 8x8x8
        "PD3": _block_diag(B, _row_decimate(8, 16)),                   # (B*8, B*16)
        "T3": np.concatenate(list(_conv_cols(w3, 8, 16, 2)), axis=0),  # (768, 64)
        "b3": _bias_row(b3, 8),
        "M3t": m3t, "M3b": m3b,
        # pool3 lane pair-max (only 64 lanes -> tiny matmul shift, not roll)
        "SH3": _lane_pair_shift(8, 8),                                 # (64,64)
        # t_conv1 on pooled conv3 (8x4x4): 3x3 stride 2 -> 8x9x9 (relu)
        "U4": np.stack([_block_diag(B, u)
                        for u in _tconv_row_place(4, 3, 8, 2)]),       # (3, B*9, B*8)
        "T4": np.concatenate([_pad_to(t, cols=128) for t in t4], axis=1),  # (64,384)
        "b4": _pad_to(_bias_row(bt1, 9), cols=128),
        # t_conv2: 8x9x9 -> 16x18x18 (relu)
        "U5": np.stack([_block_diag(B, u)
                        for u in _tconv_row_place(9, 2, 9, 1)]),       # (2, B*18, B*9)
        "T5": np.concatenate([_pad_to(t, rows=128, cols=384) for t in t5],
                             axis=1),                                  # (128,768)
        "b5": _pad_to(_bias_row(bt2, 18), cols=384),
        # t_conv3: 16x18x18 -> 32x36x36 (relu)
        "U6": np.stack([_block_diag(B, u)
                        for u in _tconv_row_place(18, 2, 18, 1)]),     # (2, B*36, B*18)
        "T6": np.concatenate([_pad_to(t, rows=384) for t in t6], axis=1),  # (384,2304)
        "b6": _bias_row(bt3, 36),
        # conv_out: 32x36x36 -> 1x36x36 (sigmoid); N zero-padded to 128 lanes
        "T7": np.concatenate([_pad_to(t, cols=128) for t in t7], axis=0),  # (3456,128)
        "b7": _pad_to(_bias_row(bco, 36), cols=128),
        "M7t": m7t, "M7b": m7b,
    }
    packed = {}
    for k, v in ops.items():
        keep_f32 = k[0] in ("b", "M")       # biases & masks stay f32 (epilogues)
        packed[k] = jnp.asarray(v, dtype=jnp.float32 if keep_f32 else jnp.bfloat16)
    return packed


# ---------------------------------------------------------------------------
# The fused Pallas kernel (B_TILE images per grid step; all VMEM-resident).
# ---------------------------------------------------------------------------

def _autoencoder_kernel(x_ref,
                        t1, b1, m1t, m1b,
                        pd2, t2, b2, m2t, m2b,
                        pd3, t3, b3, m3t, m3b,
                        sh3,
                        u4, t4, b4,
                        u5, t5, b5,
                        u6, t6, b6,
                        t7, b7, m7t, m7b,
                        o_ref, *, roll_like_numpy):
    f32, bf16 = jnp.float32, jnp.bfloat16

    def mm(a, b):
        return jnp.dot(a.astype(bf16), b.astype(bf16), preferred_element_type=f32)

    def sdown(a):                      # out[r] = a[r-1]   (wraps; caller masks)
        r = a.shape[0]
        return pltpu.roll(a, 1 if roll_like_numpy else r - 1, axis=0)

    def sup(a):                        # out[r] = a[r+1]   (wraps; caller masks)
        r = a.shape[0]
        return pltpu.roll(a, r - 1 if roll_like_numpy else 1, axis=0)

    def lleft(a, c):                   # out[:, j] = a[:, j+c]
        n = a.shape[1]
        return pltpu.roll(a, n - c if roll_like_numpy else c, axis=1)

    def pool_pair_max(a, c):
        # 2x2 max-pool pair maxes; the stride-2 decimation is folded into the
        # next layer's operators, so wrapped rows / col-blocks are never read.
        mw = jnp.maximum(a, lleft(a, c))
        return jnp.maximum(mw, sup(mw))

    def taps3(a, mt, mb):
        # [row r-1 | row r | row r+1] lane-concatenated copies, per-image edge
        # rows zeroed; the 3-tap sum then happens inside one MXU K-reduction.
        return jnp.concatenate(
            [(sdown(a) * mt[...]).astype(bf16),
             a.astype(bf16),
             (sup(a) * mb[...]).astype(bf16)], axis=1)

    relu = lambda v: jnp.maximum(v, 0.0)

    # ------------------------------ encoder ------------------------------
    x = x_ref[...]                                            # (B*32, 32) f32

    a1 = (mm(sdown(x) * m1t[...], t1[0])                      # conv1 (3 taps,
          + mm(x, t1[1])                                      #  K=32 each)
          + mm(sup(x) * m1b[...], t1[2]))
    a1 = relu(a1 + b1[...])                                   # (B*32, 1024)

    d1 = mm(pd2[...], pool_pair_max(a1, 32))                  # pool1 -> (B*16, 1024)
    a2 = relu(jnp.dot(taps3(d1, m2t, m2b), t2[...],
                      preferred_element_type=f32) + b2[...])  # conv2 -> (B*16, 256)

    d2 = mm(pd3[...], pool_pair_max(a2, 16))                  # pool2 -> (B*8, 256)
    a3 = relu(jnp.dot(taps3(d2, m3t, m3b), t3[...],
                      preferred_element_type=f32) + b3[...])  # conv3 -> (B*8, 64)

    mw3 = jnp.maximum(a3, mm(a3, sh3[...]))                   # pool3 lane pair-max
    p3 = jnp.maximum(mw3, sup(mw3))                           # (B*8, 64)

    # ------------------------------ decoder ------------------------------
    y4 = mm(p3, t4[...])                                      # (B*8, 3*128)
    a4 = relu(mm(u4[0], y4[:, 0:128]) + mm(u4[1], y4[:, 128:256])
              + mm(u4[2], y4[:, 256:384]) + b4[...])          # t_conv1 -> (B*9, 128)

    y5 = mm(a4, t5[...])                                      # (B*9, 2*384)
    a5 = relu(mm(u5[0], y5[:, 0:384]) + mm(u5[1], y5[:, 384:768])
              + b5[...])                                      # t_conv2 -> (B*18, 384)

    y6 = mm(a5, t6[...])                                      # (B*18, 2*1152)
    a6 = relu(mm(u6[0], y6[:, 0:1152]) + mm(u6[1], y6[:, 1152:2304])
              + b6[...])                                      # t_conv3 -> (B*36, 1152)

    y = jnp.dot(taps3(a6, m7t, m7b), t7[...],
                preferred_element_type=f32) + b7[...]         # conv_out -> (B*36, 128)
    o_ref[...] = 1.0 / (1.0 + jnp.exp(-y))                    # sigmoid (exp on EUP)


def _const_map(ndim):
    if ndim == 2:
        return lambda i: (0, 0)
    return lambda i: (0, 0, 0)


@functools.partial(jax.jit, static_argnames=("roll_like_numpy", "b_tile"))
def autoencoder_forward(x_nchw, packed, roll_like_numpy=True,
                        b_tile=B_TILE_DEFAULT):
    n = x_nchw.shape[0]
    n_tiles = -(-n // b_tile)
    n_pad = n_tiles * b_tile
    x = x_nchw.astype(jnp.float32).reshape(n, 32, 32)          # NCHW, Cin == 1
    if n_pad != n:
        x = jnp.concatenate(
            [x, jnp.zeros((n_pad - n, 32, 32), jnp.float32)], axis=0)
    x_rows = x.reshape(n_pad * 32, 32)      # images stacked along the M axis

    ops = [packed[k] for k in _OP_ORDER]
    in_specs = [pl.BlockSpec((b_tile * 32, 32), lambda i: (i, 0))]
    in_specs += [pl.BlockSpec(op.shape, _const_map(op.ndim)) for op in ops]

    out = pl.pallas_call(
        functools.partial(_autoencoder_kernel, roll_like_numpy=roll_like_numpy),
        out_shape=jax.ShapeDtypeStruct((n_pad * 36, 128), jnp.float32),
        grid_spec=pltpu.PrefetchScalarGridSpec(
            num_scalar_prefetch=0,
            grid=(n_tiles,),
            in_specs=in_specs,
            out_specs=pl.BlockSpec((b_tile * 36, 128), lambda i: (i, 0)),
        ),
        compiler_params=pltpu.CompilerParams(
            dimension_semantics=("parallel",),      # shard grid across TCs (v7x)
            vmem_limit_bytes=40 * 1024 * 1024,      # ops ~5 MiB bf16, acts few MiB
        ),
    )(x_rows, *ops)

    y = out.reshape(n_pad, 36, 128)[:n, :, :36]     # drop lane padding + batch pad
    return y.reshape(n, 1, 36, 36)                  # back to NCHW (Cout == 1)


def _probe_roll_semantics():
    """pltpu.roll is expected to match np.roll; verify once on device so every
    shift amount is provably in the right direction."""
    def k(x_ref, o_ref):
        o_ref[...] = pltpu.roll(x_ref[...], 1, axis=1)
    x = jnp.arange(8 * 128, dtype=jnp.float32).reshape(8, 128)
    y = pl.pallas_call(k, out_shape=jax.ShapeDtypeStruct((8, 128), jnp.float32))(x)
    return bool(y[0, 0] == 127.0)   # np.roll(row, 1)[0] == row[-1]


# ---------------------------------------------------------------------------
# Parameters (PyTorch module layout) and driver.
# ---------------------------------------------------------------------------

def init_params(key):
    shapes = {
        "conv1_w": (32, 1, 3, 3),    "conv1_b": (32,),
        "conv2_w": (16, 32, 3, 3),   "conv2_b": (16,),
        "conv3_w": (8, 16, 3, 3),    "conv3_b": (8,),
        "t_conv1_w": (8, 8, 3, 3),   "t_conv1_b": (8,),
        "t_conv2_w": (8, 16, 2, 2),  "t_conv2_b": (16,),
        "t_conv3_w": (16, 32, 2, 2), "t_conv3_b": (32,),
        "conv_out_w": (1, 32, 3, 3), "conv_out_b": (1,),
    }
    params = {}
    keys = jax.random.split(key, len(shapes))
    for k, (name, shape) in zip(keys, sorted(shapes.items())):
        params[name] = 0.1 * jax.random.normal(k, shape, dtype=jnp.float32)
    return params


if __name__ == "__main__":
    key = jax.random.PRNGKey(0)
    k_x, k_p = jax.random.split(key)
    # Input must survive three 2x2 pools: 32 -> 16 -> 8 -> 4.  batch=16 gives a
    # grid of 2 tiles (keeps both v7x TensorCores busy).
    x = jax.random.normal(k_x, (16, 1, 32, 32), dtype=jnp.float32)
    params = init_params(k_p)

    packed = pack_params(params, b_tile=B_TILE_DEFAULT)   # one-time weight packing
    roll_np = _probe_roll_semantics()

    y = autoencoder_forward(x, packed, roll_like_numpy=roll_np,
                            b_tile=B_TILE_DEFAULT)
    jax.block_until_ready(y)

    # Mirrors PyTorch: decoder with stride-2 transposed convs yields 36x36.
    assert y.shape == (16, 1, 36, 36), y.shape
    assert bool(jnp.all((y >= 0.0) & (y <= 1.0)))  # sigmoid output range
    print("KERNEL_OK")
</pallas_src>

<mosaic_0001>
module attributes {stable_mosaic.version = 11 : i64} {
  func.func @k(%arg0: memref<8x128xf32, #tpu.memory_space<vmem>>, %arg1: memref<8x128xf32, #tpu.memory_space<vmem>>) attributes {dimension_semantics = [], scalar_prefetch = 0 : i64, scratch_operands = 0 : i64, tpu.core_type = #tpu.core_type<tc>} {
    %c0 = arith.constant 0 : index
    %c0_0 = arith.constant 0 : index
    %0 = vector.load %arg0[%c0, %c0_0] : memref<8x128xf32, #tpu.memory_space<vmem>>, vector<8x128xf32>
    %c1_i32 = arith.constant 1 : i32
    %1 = tpu.dynamic_rotate %0 by %c1_i32 dim 1 : vector<8x128xf32>, i32 -> vector<8x128xf32>
    %c0_1 = arith.constant 0 : index
    %c0_2 = arith.constant 0 : index
    %2 = vector.load %arg1[%c0_1, %c0_2] : memref<8x128xf32, #tpu.memory_space<vmem>>, vector<8x128xf32>
    tpu.vector_store %arg1[%c0_1, %c0_2], %1 {strides = array<i32>} : memref<8x128xf32, #tpu.memory_space<vmem>>, vector<8x128xf32>,
    return
  }
}

</mosaic_0001>

<bundles_post_ra>
// kernel: tpu_custom_call.1
= control target key start
LH: loop header
LB: loop body
LE: loop exit
PB: predicated region body
PF: predicated region fallthrough
CT: control target
= control target key end

     0   :  { %6 = vsyncpa [#allocation3], 0  ;;  %s128_s0 = inlined_call_operand.hbm [shape: f32[8,128], index: 0, kind: input, shape index: {}]   ;;  %s129_s1 = inlined_call_operand.hbm [shape: f32[8,128], index: 1, kind: output, shape index: {}]  }
   0x1   :  { %7 = vsyncpa [#allocation4], 0  ;;  %s91_s6 = smov [#allocation2]   ;;  %s43_s10 = scalar_lea.hbm %s128_s0, 128 }
   0x2   :  { %s14_s7 = sshll.u32 %s91_s6, 4  ;;  %p44_p0 = scmp.ne.s32.totalorder %s128_s0, %s43_s10  ;;  %s15_s7 = int_to_ptr.vmem [resolvable:$true] %s14_s7 }
   0x3   :  { %p47_p1 = scmp.lt.u32.totalorder %s43_s10, %s128_s0 }
   0x5   :  { %p49_p2 = pnand %p47_p1, %p44_p0 }
   0x7   :  { %52 = shalt.err (!%p49_p2)
}
   0x8   :  { %s53_s15 = scalar_lea.vmem %s15_s7, 128  ;;  %p58_p4 = scmp.lt.s32.totalorder %s15_s7, %s15_s7 }
   0x9   :  { %p54_p3 = scmp.ne.s32.totalorder %s15_s7, %s53_s15  ;;  %p59_p5 = scmp.lt.s32.totalorder %s53_s15, %s53_s15 }
   0xb   :  { %p60_p6 = por %p59_p5, %p58_p4 }
   0xd   :  { %p61_p7 = pnand %p60_p6, %p54_p3 }
   0xf   :  { %64 = shalt.err (!%p61_p7)
}
  0x10   :  { %17 = dma.hbm_to_vmem [thread:$0]  %s128_s0, 128, %s15_s7, [#allocation3]  }
  0x11   :  { %87 = dma.done.wait [#allocation3], 128  }
  0x12   :  { %88 = vsyncadd [#allocation3], 4294967168  ;;  %v21_v0 = vld [vmem:[#allocation2] sm:$0xff]  ;;  %s92_s18 = smov 1   ;;  %s93_s19 = smov [#allocation5]  }
  0x13   :  { %22 = vrot.lane.b32.xlu0 %v21_v0, %s92_s18  ;;  %s31_s20 = sshll.u32 %s93_s19, 4  ;;  %s32_s20 = int_to_ptr.vmem [resolvable:$true] %s31_s20 }
  0x14   :  { %s65_s21 = scalar_lea.vmem %s32_s20, 128  ;;  %p70_p9 = scmp.lt.s32.totalorder %s32_s20, %s32_s20 }
  0x15   :  { %p66_p8 = scmp.ne.s32.totalorder %s32_s20, %s65_s21  ;;  %p71_p10 = scmp.lt.s32.totalorder %s65_s21, %s65_s21 }
  0x17   :  { %p72_p11 = por %p71_p10, %p70_p9 }
  0x19   :  { %p73_p12 = pnand %p72_p11, %p66_p8 }
  0x85   :  { %v23_v1 = vpop.permute.xlu0 %22 }
  0x86   :  { %24 = vst [vmem:[#allocation5] sm:$0xff] %v23_v1 }
  0x87   :  { %76 = shalt.err (!%p73_p12)
}
  0x88   :  { %s77_s0 = scalar_lea.hbm %s129_s1, 128 }
  0x89   :  { %p78_p13 = scmp.ne.s32.totalorder %s129_s1, %s77_s0  ;;  %p81_p0 = scmp.lt.u32.totalorder %s77_s0, %s129_s1 }
  0x8b   :  { %p83_p1 = pnand %p81_p0, %p78_p13 }
  0x8d   :  { %86 = shalt.err (!%p83_p1)
}
  0x8e   :  { %34 = dma.vmem_to_hbm [thread:$0]  %s32_s20, 128, %s129_s1, [#allocation4]  }
  0x8f   :  { %89 = dma.done.wait [#allocation4], 128  }
  0x90   :  { %90 = vsyncadd [#allocation4], 4294967168 }
  0x91   :  { %38 = vsyncpa [#allocation3], 1 }
  0x92   :  { %39 = vsyncpa [#allocation4], 1 }

</bundles_post_ra>
